<compile_context>
chip_gen: v7x
topology: tpu7x:2x2x1
jax: 0.10.0
libtpu: 0.0.40
codegen_flags: <defaults>
</compile_context>

<pallas_src>
import jax
import jax.numpy as jnp
from jax import lax
from jax.experimental import pallas as pl
from jax.experimental.pallas import tpu as pltpu

MIN_YEAR = 2009
NUM_CLASSES = 153
BN_EPS = 1e-5


# ----------------------------------------------------------------------------
# helpers
# ----------------------------------------------------------------------------
def _round_up(v, m):
    return (v + m - 1) // m * m


def _fold_bn(bias, gamma, beta, mean, var):
    scale = gamma * lax.rsqrt(var + BN_EPS)
    shift = (bias - mean) * scale + beta
    return (scale.reshape(1, -1).astype(jnp.float32),
            shift.reshape(1, -1).astype(jnp.float32))


# ----------------------------------------------------------------------------
# Kernels
# ----------------------------------------------------------------------------
def _feats_kernel(x_ref, side_ref, lab_emb_ref, year_tab_ref, o_ref):
    """Per row-tile: label index_add + per-year table gather, one lane-dense store."""
    tm, f = x_ref.shape
    c_pad = lab_emb_ref.shape[0]          # classes padded to 256 (MXU-friendly)
    ny, yw = year_tab_ref.shape           # years x (64 + pe)
    f_pad = o_ref.shape[1]                # feature width padded to 128 multiple

    y = side_ref[:, 0:1]                  # [tm,1] int32
    mask = side_ref[:, 1:2].astype(jnp.float32)
    yr = side_ref[:, 2:3]

    # --- label-embedding index_add: x += mask[:,None] * label_emb[y] ---
    # one-hot gather on the MXU (bf16 operands, f32 accumulation; output is bf16
    # anyway so the bf16 table is an intentional, consistent relaxation)
    lab_onehot = (lax.broadcasted_iota(jnp.int32, (tm, c_pad), 1) == y
                  ).astype(jnp.bfloat16)
    gathered = jnp.dot(lab_onehot, lab_emb_ref[...],
                       preferred_element_type=jnp.float32)      # [tm, F]
    x_out = x_ref[...] + mask * gathered

    # --- year path: gather precomputed [relu(bn(label_dist@W+b)) | pe] rows ---
    yr_onehot = (lax.broadcasted_iota(jnp.int32, (tm, ny), 1) == yr
                 ).astype(jnp.bfloat16)
    year_pe = jnp.dot(yr_onehot, year_tab_ref[...],
                      preferred_element_type=jnp.float32)       # [tm, 64+PE]

    # assemble the whole slab in registers and issue ONE lane-dense store
    parts = [x_out, year_pe]
    pad_w = f_pad - f - yw
    if pad_w:
        parts.append(jnp.zeros((tm, pad_w), jnp.float32))
    o_ref[...] = jnp.concatenate(parts, axis=1).astype(o_ref.dtype)


def _predictor_kernel(x_ref, w_ref, shift_ref, alpha_ref, o_ref):
    # z = x @ (W*bn_scale); y = prelu(z + shift)  (bias + BN folded offline)
    z = jnp.dot(x_ref[...].astype(jnp.bfloat16), w_ref[...],
                preferred_element_type=jnp.float32)
    z = z + shift_ref[...]
    alpha = alpha_ref[0, 0]
    o_ref[...] = jnp.where(z >= 0.0, z, alpha * z).astype(o_ref.dtype)


# ----------------------------------------------------------------------------
# One-time parameter preparation (hoisted out of the per-step hot path)
# ----------------------------------------------------------------------------
def prepare_encoder_constants(params):
    label_emb = params["label_emb"]
    c, f = label_emb.shape
    c_pad = _round_up(c, 128)             # 153 -> 256: full MXU contraction
    lab_emb_p = jnp.zeros((c_pad, f), jnp.bfloat16).at[:c].set(
        label_emb.astype(jnp.bfloat16))

    # per-year precompute: relu(bn(label_dist_emb[yr] @ W + b)) concat pe_emb[yr]
    mlp_scale, mlp_shift = _fold_bn(
        params["mlp_b"], params["mlp_bn_gamma"], params["mlp_bn_beta"],
        params["mlp_bn_mean"], params["mlp_bn_var"])
    z = jnp.dot(params["label_dist_emb"].astype(jnp.float32),
                params["mlp_w"].astype(jnp.float32),
                precision=lax.Precision.HIGHEST)                # tiny, once
    year_tab = jnp.maximum(z * mlp_scale + mlp_shift, 0.0)
    year_pe_tab = jnp.concatenate(
        [year_tab, params["pe_emb"].astype(jnp.float32)], axis=1
    ).astype(jnp.bfloat16)                                      # [ny, 64+PE]

    # predictor: fold bias + BN scale into the weight columns
    p_scale, p_shift = _fold_bn(
        params["pred_b"], params["pred_bn_gamma"], params["pred_bn_beta"],
        params["pred_bn_mean"], params["pred_bn_var"])
    pred_w = (params["pred_w"].astype(jnp.float32) * p_scale).astype(jnp.bfloat16)

    return {
        "lab_emb_p": lab_emb_p,
        "year_pe_tab": year_pe_tab,
        "pred_w": pred_w,
        "pred_shift": p_shift,
        "pred_alpha": jnp.asarray(params["pred_prelu_alpha"],
                                  jnp.float32).reshape(1, 1),
    }


# ----------------------------------------------------------------------------
# Wrappers
# ----------------------------------------------------------------------------
def fused_feats(x, side, lab_emb_p, year_pe_tab, *, tile_rows=512):
    """feats = [x + mask*label_emb[y] | relu(bn(label_dist_emb[yr]@W+b)) | pe[yr]]"""
    n, f = x.shape
    c_pad = lab_emb_p.shape[0]
    ny, yw = year_pe_tab.shape
    f_total = f + yw
    f_pad = _round_up(f_total, 128)       # lane-dense output slab

    # keep row grid >= 2 steps on large n (v7x megacore); ragged tail via cdiv
    tm = min(tile_rows, _round_up(n, 8))
    grid = (pl.cdiv(n, tm),)

    out = pl.pallas_call(
        _feats_kernel,
        out_shape=jax.ShapeDtypeStruct((n, f_pad), jnp.bfloat16),
        grid=grid,
        in_specs=[
            pl.BlockSpec((tm, f), lambda i: (i, 0)),          # x tile (f32)
            pl.BlockSpec((tm, 3), lambda i: (i, 0)),          # [y|mask|year] int32
            pl.BlockSpec((c_pad, f), lambda i: (0, 0)),       # label_emb (invariant)
            pl.BlockSpec((ny, yw), lambda i: (0, 0)),         # per-year table
        ],
        out_specs=pl.BlockSpec((tm, f_pad), lambda i: (i, 0)),
        compiler_params=pltpu.CompilerParams(
            dimension_semantics=("parallel",),
            vmem_limit_bytes=32 * 1024 * 1024),
    )(x, side, lab_emb_p, year_pe_tab)
    return out[:, :f_total] if f_pad != f_total else out


def predictor(h, pred_w, pred_shift, pred_alpha, *, tile_rows=512):
    """Linear(H,H) + BatchNorm1d(H) (eval) + PReLU, Dropout = identity (eval)."""
    n, k = h.shape
    m = pred_w.shape[1]
    tm = min(tile_rows, _round_up(n, 8))

    return pl.pallas_call(
        _predictor_kernel,
        out_shape=jax.ShapeDtypeStruct((n, m), jnp.bfloat16),
        grid=(pl.cdiv(n, tm),),
        in_specs=[
            pl.BlockSpec((tm, k), lambda i: (i, 0)),          # h tile (f32 -> bf16 in-kernel)
            pl.BlockSpec((k, m), lambda i: (0, 0)),           # folded W (bf16, invariant)
            pl.BlockSpec((1, m), lambda i: (0, 0)),           # folded shift (f32)
            pl.BlockSpec(memory_space=pltpu.SMEM),            # PReLU alpha (scalar)
        ],
        out_specs=pl.BlockSpec((tm, m), lambda i: (i, 0)),
        compiler_params=pltpu.CompilerParams(
            dimension_semantics=("parallel",)),
    )(h, pred_w, pred_shift, pred_alpha)


# ----------------------------------------------------------------------------
# Encoder forward (dense feature-preparation path + predictor head)
# ----------------------------------------------------------------------------
def encoder_forward(consts, x, year_id, y_full, batch_size, h_online):
    # year index (lower-clipped, as in the reference)
    year_input = jnp.maximum(year_id.astype(jnp.int32) - MIN_YEAR, 0)

    # label-embedding index_add mask
    batch_label_mask = (y_full >= 0)
    batch_label_mask = batch_label_mask.at[:batch_size].set(False)
    # TODO(synk): n_id / valid_mask paper filtering and training-time random
    # label masking require external sampler state; omitted.
    y_clipped = jnp.where(y_full >= 0, y_full, 0).astype(jnp.int32)

    # pack per-row scalars into one side array -> single narrow DMA per tile
    side = jnp.stack(
        [y_clipped, batch_label_mask.astype(jnp.int32), year_input], axis=1)

    feats = fused_feats(x, side, consts["lab_emb_p"], consts["year_pe_tab"])

    # TODO(synk): online_encoder GNN + augmentations + target encoder are external;
    # the predictor head is applied to the supplied hidden representation.
    pred = predictor(h_online, consts["pred_w"], consts["pred_shift"],
                     consts["pred_alpha"])
    return feats, pred


def init_params(key, *, num_years, num_paper_features, pe_dim, hidden):
    ks = jax.random.split(key, 10)

    def u(k, shape, s=0.05):
        return jax.random.uniform(k, shape, jnp.float32, -s, s)

    return {
        "label_dist_emb": u(ks[0], (num_years, NUM_CLASSES), 1.0),
        "pe_emb": u(ks[1], (num_years, pe_dim), 1.0),
        "label_emb": u(ks[2], (NUM_CLASSES, num_paper_features), 1.0),
        # label_dist_emb_mlp : Linear(153, 64) + BatchNorm1d(64)
        "mlp_w": u(ks[3], (NUM_CLASSES, 64)),
        "mlp_b": u(ks[4], (64,)),
        "mlp_bn_gamma": jnp.ones((64,), jnp.float32) * 1.1,
        "mlp_bn_beta": jnp.full((64,), 0.05, jnp.float32),
        "mlp_bn_mean": jnp.full((64,), 0.02, jnp.float32),
        "mlp_bn_var": jnp.full((64,), 0.9, jnp.float32),
        # predictor : Linear(hidden, hidden) + BatchNorm1d(hidden) + PReLU
        "pred_w": u(ks[5], (hidden, hidden)),
        "pred_b": u(ks[6], (hidden,)),
        "pred_bn_gamma": jnp.ones((hidden,), jnp.float32) * 0.95,
        "pred_bn_beta": jnp.full((hidden,), -0.03, jnp.float32),
        "pred_bn_mean": jnp.full((hidden,), 0.01, jnp.float32),
        "pred_bn_var": jnp.full((hidden,), 1.2, jnp.float32),
        "pred_prelu_alpha": jnp.float32(0.25),
    }


if __name__ == "__main__":
    # small shapes consistent with the module (153 classes / 64-wide label MLP fixed)
    N = 16            # nodes in the sampled batch
    BATCH = 4         # batch.batch_size (seed nodes)
    F_PAPER = 32      # num_paper_features (small stand-in for 128+64)
    PE_DIM = 16       # pe_embedding width
    HIDDEN = 64       # hidden_channels (small stand-in for 512)
    NUM_YEARS = 16

    key = jax.random.PRNGKey(0)
    k_x, k_year, k_y, k_h, k_p = jax.random.split(key, 5)

    x = jax.random.normal(k_x, (N, F_PAPER), jnp.float32)
    year_id = MIN_YEAR - 1 + jax.random.randint(k_year, (N,), 0, NUM_YEARS)
    y_full = jax.random.randint(k_y, (N,), -1, NUM_CLASSES)
    h_online = jax.random.normal(k_h, (N, HIDDEN), jnp.float32)

    params = init_params(k_p, num_years=NUM_YEARS, num_paper_features=F_PAPER,
                         pe_dim=PE_DIM, hidden=HIDDEN)
    consts = prepare_encoder_constants(params)   # one-time prep, off the hot path

    feats, pred = encoder_forward(consts, x, year_id, y_full, BATCH, h_online)
    jax.block_until_ready((feats, pred))

    assert feats.shape == (N, F_PAPER + 64 + PE_DIM)
    assert pred.shape == (N, HIDDEN)
    print("KERNEL_OK")
</pallas_src>

<mosaic_0001>
module attributes {stable_mosaic.version = 11 : i64} {
  func.func @_feats_kernel(%arg0: i32, %arg1: memref<16x32xf32, #tpu.memory_space<vmem>>, %arg2: memref<16x3xi32, #tpu.memory_space<vmem>>, %arg3: memref<256x32xbf16, #tpu.memory_space<vmem>>, %arg4: memref<16x80xbf16, #tpu.memory_space<vmem>>, %arg5: memref<16x128xbf16, #tpu.memory_space<vmem>>) attributes {dimension_semantics = [#tpu.dimension_semantics<parallel>], iteration_bounds = array<i64: 1>, scalar_prefetch = 0 : i64, scratch_operands = 0 : i64, tpu.core_type = #tpu.core_type<tc>, window_params = [{transform_indices = @transform_0, window_bounds = array<i64: 16, 32>}, {transform_indices = @transform_1, window_bounds = array<i64: 16, 3>}, {pipeline_mode = #tpu.pipeline_mode<synchronous>, transform_indices = @transform_2, window_bounds = array<i64: 256, 32>}, {pipeline_mode = #tpu.pipeline_mode<synchronous>, transform_indices = @transform_3, window_bounds = array<i64: 16, 80>}, {transform_indices = @transform_4, window_bounds = array<i64: 16, 128>}]} {
    %c0 = arith.constant 0 : index
    %c0_0 = arith.constant 0 : index
    %0 = vector.load %arg2[%c0, %c0_0] : memref<16x3xi32, #tpu.memory_space<vmem>>, vector<16x1xi32>
    %c0_1 = arith.constant 0 : index
    %c1 = arith.constant 1 : index
    %1 = vector.load %arg2[%c0_1, %c1] : memref<16x3xi32, #tpu.memory_space<vmem>>, vector<16x1xi32>
    %2 = arith.sitofp %1 : vector<16x1xi32> to vector<16x1xf32>
    %c0_2 = arith.constant 0 : index
    %c2 = arith.constant 2 : index
    %3 = vector.load %arg2[%c0_2, %c2] : memref<16x3xi32, #tpu.memory_space<vmem>>, vector<16x1xi32>
    %4 = tpu.iota {dimensions = array<i32: 1>} : vector<16x256xi32>
    %5 = vector.broadcast %0 : vector<16x1xi32> to vector<16x256xi32>
    %6 = arith.cmpi eq, %4, %5 : vector<16x256xi32>
    %7 = arith.extui %6 : vector<16x256xi1> to vector<16x256xi32>
    %8 = arith.sitofp %7 : vector<16x256xi32> to vector<16x256xf32>
    %9 = arith.truncf %8 : vector<16x256xf32> to vector<16x256xbf16>
    %c0_3 = arith.constant 0 : index
    %c0_4 = arith.constant 0 : index
    %10 = vector.load %arg3[%c0_3, %c0_4] : memref<256x32xbf16, #tpu.memory_space<vmem>>, vector<256x32xbf16>
    %cst = arith.constant dense<0.000000e+00> : vector<16x32xf32>
    %11 = tpu.matmul %9, %10, %cst {dimension_numbers = #tpu.dot_dimension_numbers<[1], [0], [0], [1], [0, 0, 1, 1], [], []>} : vector<16x256xbf16>, vector<256x32xbf16>, vector<16x32xf32> -> vector<16x32xf32>
    %c0_5 = arith.constant 0 : index
    %c0_6 = arith.constant 0 : index
    %12 = vector.load %arg1[%c0_5, %c0_6] : memref<16x32xf32, #tpu.memory_space<vmem>>, vector<16x32xf32>
    %13 = vector.broadcast %2 : vector<16x1xf32> to vector<16x32xf32>
    %14 = arith.mulf %13, %11 : vector<16x32xf32>
    %15 = arith.addf %12, %14 : vector<16x32xf32>
    %16 = tpu.iota {dimensions = array<i32: 1>} : vector<16x16xi32>
    %17 = vector.broadcast %3 : vector<16x1xi32> to vector<16x16xi32>
    %18 = arith.cmpi eq, %16, %17 : vector<16x16xi32>
    %19 = arith.extui %18 : vector<16x16xi1> to vector<16x16xi32>
    %20 = arith.sitofp %19 : vector<16x16xi32> to vector<16x16xf32>
    %21 = arith.truncf %20 : vector<16x16xf32> to vector<16x16xbf16>
    %c0_7 = arith.constant 0 : index
    %c0_8 = arith.constant 0 : index
    %22 = vector.load %arg4[%c0_7, %c0_8] : memref<16x80xbf16, #tpu.memory_space<vmem>>, vector<16x80xbf16>
    %cst_9 = arith.constant dense<0.000000e+00> : vector<16x80xf32>
    %23 = tpu.matmul %21, %22, %cst_9 {dimension_numbers = #tpu.dot_dimension_numbers<[1], [0], [0], [1], [0, 0, 1, 1], [], []>} : vector<16x16xbf16>, vector<16x80xbf16>, vector<16x80xf32> -> vector<16x80xf32>
    %cst_10 = arith.constant 0.000000e+00 : f32
    %24 = vector.broadcast %cst_10 : f32 to vector<16x16xf32>
    %25 = tpu.concatenate %15, %23, %24 in 1 : vector<16x32xf32>, vector<16x80xf32>, vector<16x16xf32> -> vector<16x128xf32>
    %26 = arith.truncf %25 : vector<16x128xf32> to vector<16x128xbf16>
    %c0_11 = arith.constant 0 : index
    %c0_12 = arith.constant 0 : index
    %27 = vector.load %arg5[%c0_11, %c0_12] : memref<16x128xbf16, #tpu.memory_space<vmem>>, vector<16x128xbf16>
    tpu.vector_store %arg5[%c0_11, %c0_12], %26 {strides = array<i32>} : memref<16x128xbf16, #tpu.memory_space<vmem>>, vector<16x128xbf16>,
    return
  }
  func.func @transform_0(%arg0: i32) -> (i32, i32) {
    %c0_i32 = arith.constant 0 : i32
    %c0_i32_0 = arith.constant 0 : i32
    return %arg0, %c0_i32 : i32, i32
  }
  func.func @transform_1(%arg0: i32) -> (i32, i32) {
    %c0_i32 = arith.constant 0 : i32
    %c0_i32_0 = arith.constant 0 : i32
    return %arg0, %c0_i32 : i32, i32
  }
  func.func @transform_2(%arg0: i32) -> (i32, i32) {
    %c0_i32 = arith.constant 0 : i32
    %c0_i32_0 = arith.constant 0 : i32
    %c0_i32_1 = arith.constant 0 : i32
    return %c0_i32, %c0_i32_0 : i32, i32
  }
  func.func @transform_3(%arg0: i32) -> (i32, i32) {
    %c0_i32 = arith.constant 0 : i32
    %c0_i32_0 = arith.constant 0 : i32
    %c0_i32_1 = arith.constant 0 : i32
    return %c0_i32, %c0_i32_0 : i32, i32
  }
  func.func @transform_4(%arg0: i32) -> (i32, i32) {
    %c0_i32 = arith.constant 0 : i32
    %c0_i32_0 = arith.constant 0 : i32
    return %arg0, %c0_i32 : i32, i32
  }
}

</mosaic_0001>

<bundles_post_ra>
// kernel: tpu_custom_call.1
= control target key start
LH: loop header
LB: loop body
LE: loop exit
PB: predicated region body
PF: predicated region fallthrough
CT: control target
= control target key end

     0   :  { %v465_v1 = vmov 2   ;;  %v466_v2 = vmov 0   ;;  %v467_v4 = vmov 0.0   ;;  %vm468_vm0 = vmmov 0   ;;  %s579_s0 = inlined_call_operand.vmem [shape: f32[16,32], index: 0, kind: input, shape index: {}]   ;;  %s580_s1 = inlined_call_operand.vmem [shape: s32[16,3], index: 1, kind: input, shape index: {}]   ;;  %s581_s2 = inlined_call_operand.vmem [shape: bf16[256,32], index: 2, kind: input, shape index: {}]   ;;  %s582_s3 = inlined_call_operand.vmem [shape: bf16[16,80], index: 3, kind: input, shape index: {}]   ;;  %s583_s4 = inlined_call_operand.hbm [shape: bf16[16,128], index: 4, kind: output, shape index: {}]  }
   0x1   :  { %v19_v0 = vld [vmem:[%s580_s1] sm:$0xff]  ;;  %414 = vset.pattern.permute.xlu0 %v465_v1  ;;  %415 = vset.pattern.permute.xlu1 %v466_v2  ;;  %v20_v3 = vld [vmem:[%s580_s1 + $0x8] sm:$0xff]  ;;  %v469_v11 = vmov 1   ;;  %v429_v13 = vld [vmem:[%s581_s2 + $0x50] sm:$0xff]  }
   0x2   :  { %232 = vperm.xlu0 %414, %v19_v0   ;;  %27 = vperm.xlu1 %415, %v19_v0   ;;  %v424_v5 = vld [vmem:[%s582_s3] sm:$0xff]   ;;  %v427_v8 = vld [vmem:[%s581_s2 + $0x48] sm:$0xff]   ;;  %v22_v9 = vcvt.s32.f32 %v20_v3  ;;  %v21_v10 = vcvt.s32.f32 %v19_v0  ;;  %v430_v14 = vld [vmem:[%s581_s2 + $0x10] sm:$0xff]  }
   0x3   :  { %398 = vmatprep.subr.bf16.mxu1 %v467_v4  ;;  %400 = vmatprep.mubr.msk.bf16.mxu1 %vm468_vm0, %v467_v4  ;;  %v425_v6 = vld [vmem:[%s581_s2 + $0x40] sm:$0xff]   ;;  %v428_v12 = vld [vmem:[%s581_s2 + $0x8] sm:$0xff]   ;;  %v431_v15 = vld [vmem:[%s581_s2 + $0x58] sm:$0xff]  }
   0x4   :  { %399 = vmatpush3.bf16.msra.mxu1 %v424_v5  ;;  %v426_v7 = vld [vmem:[%s581_s2] sm:$0xff]   ;;  %374 = vmatprep.subr.bf16.mxu0 %v425_v6 }
   0x5   :  { %375 = vmatpush3.bf16.msra.mxu0 %v426_v7 }
   0x6   :  { %235 = vperm.xlu0 %414, %v20_v3   ;;  %30 = vperm.xlu1 %415, %v20_v3  }
   0x7   :  { %376 = vmatprep.subr.bf16.mxu0 %v427_v8 }
   0x9   :  { %377 = vmatpush3.bf16.msra.mxu0 %v428_v12 }
   0xa   :  { %417 = vset.pattern.permute.xlu1 %v469_v11  ;;  %416 = vset.pattern.permute.xlu0 %v469_v11 }
   0xb   :  { %224 = vperm.xlu1 %417, %v22_v9   ;;  %219 = vperm.xlu0 %416, %v21_v10  }
   0xc   :  { %378 = vmatprep.subr.bf16.mxu0 %v429_v13 }
   0xd   :  { %9 = vsyncpa [#allocation3], 0  ;;  %379 = vmatpush3.bf16.msra.mxu0 %v430_v14  ;;  %v432_v16 = vld [vmem:[%s581_s2 + $0x18] sm:$0xff]   ;;  %v433_v17 = vld [vmem:[%s581_s2 + $0x60] sm:$0xff]   ;;  %v23_v25 = vlaneseq  ;;  %vm252_vm7 = vcmask 130048   ;;  %vm305_vm10 = vcmask 261120  }
   0xe   :  { %380 = vmatprep.subr.bf16.mxu0 %v431_v15  ;;  %v434_v18 = vld [vmem:[%s581_s2 + $0x20] sm:$0xff]   ;;  %v435_v19 = vld [vmem:[%s581_s2 + $0x68] sm:$0xff]   ;;  %v437_v21 = vld [vmem:[%s581_s2 + $0x70] sm:$0xff]   ;;  %v470_v35 = vmov 1.0|1.0   ;;  %vm308_vm11 = vcmask 916480  }
   0xf   :  { %423 = vset.pattern.permute.xlu0 %v465_v1  ;;  %v436_v20 = vld [vmem:[%s581_s2 + $0x28] sm:$0xff]   ;;  %v438_v22 = vld [vmem:[%s581_s2 + $0x30] sm:$0xff]   ;;  %v439_v23 = vld [vmem:[%s581_s2 + $0x78] sm:$0xff]   ;;  %v24_v26 = vand.u32 127, %v23_v25  ;;  %s472_s27 = smov [#allocation2]  }
  0x10   :  { %v440_v24 = vld [vmem:[%s581_s2 + $0x38] sm:$0xff]   ;;  %s471_s2 = smov 32   ;;  %v216_v51 = vld [vmem:[%s579_s0 + $0x8] sm:$0xff]  ;;  %v215_v52 = vld [vmem:[%s579_s0] sm:$0xff]  ;;  %s326_s28 = sshll.u32 %s472_s27, 4  ;;  %s327_s28 = int_to_ptr.vmem [resolvable:$true] %s326_s28 }
  0x11   :  { %381 = vmatpush3.bf16.msra.mxu0 %v432_v16  ;;  %v25_v29 = vadd.s32 128, %v24_v26  ;;  %s441_s29 = scalar_lea.vmem %s327_s28, 128  ;;  %p446_p1 = scmp.lt.s32.totalorder %s327_s28, %s327_s28 }
  0x12   :  { %382 = vmatprep.subr.bf16.mxu0 %v433_v17  ;;  %p442_p0 = scmp.ne.s32.totalorder %s327_s28, %s441_s29  ;;  %p447_p2 = scmp.lt.s32.totalorder %s441_s29, %s441_s29 }
  0x14   :  { %p448_p3 = por %p447_p2, %p446_p1 }
  0x15   :  { %383 = vmatpush3.bf16.msra.mxu0 %v434_v18 }
  0x16   :  { %384 = vmatprep.subr.bf16.mxu0 %v435_v19  ;;  %p449_p4 = pnand %p448_p3, %p442_p0 }
  0x19   :  { %385 = vmatpush3.bf16.msra.mxu0 %v436_v20 }
  0x1a   :  { %386 = vmatprep.subr.bf16.mxu0 %v437_v21 }
  0x1d   :  { %387 = vmatpush3.bf16.msra.mxu0 %v438_v22 }
  0x1e   :  { %388 = vmatprep.subr.bf16.mxu0 %v439_v23 }
  0x21   :  { %389 = vmatpush3.bf16.msra.mxu0 %v440_v24 }
  0x81   :  { %v233_v27 = vpop.permute.xlu0 %232  ;;  %v28_v28 = vpop.permute.xlu1 %27 }
  0x82   :  { %vm237_vm1 = vcmp.eq.s32.totalorder %v24_v26, %v233_v27  ;;  %vm32_vm2 = vcmp.eq.s32.totalorder %v24_v26, %v28_v28  ;;  %vm33_vm3 = vcmp.eq.s32.totalorder %v25_v29, %v28_v28 }
  0x83   :  { %v361_v32 = vsel %vm237_vm1, 1.0, %v467_v4 }
  0x85   :  { %v236_v30 = vpop.permute.xlu0 %235  ;;  %v31_v31 = vpop.permute.xlu1 %30 }
  0x86   :  { %vm238_vm4 = vcmp.eq.s32.totalorder %v24_v26, %v236_v30  ;;  %vm34_vm5 = vcmp.eq.s32.totalorder %v24_v26, %v31_v31  ;;  %vm35_vm6 = vcmp.eq.s32.totalorder %v25_v29, %v31_v31 }
  0x87   :  { %v362_v33 = vsel %vm238_vm4, 1.0, %v467_v4  ;;  %vm359_vm8 = vmpackc.low %vm34_vm5, %vm32_vm2 }
  0x88   :  { %v243_v34 = vpack.c.bf16 %v362_v33, %v361_v32  ;;  %vm357_vm9 = vmpackc.low %vm35_vm6, %vm33_vm3 }
  0x89   :  { %358 = vmatprep.mubr.msk.bf16.mxu0 %vm357_vm9, %v470_v35 }
  0x8a   :  { %401 = vmatmul.mubr.msk.bf16.vlgmr.msra.gmra.mrb[0].mxu1 %vm252_vm7, %v243_v34  ;;  %360 = vmatmul.mubr.msk.bf16.vlgmr.msra.gmra.mrb[0].mxu0 %vm359_vm8, %v470_v35  ;;  %v225_v47 = vpop.permute.xlu1 %224  ;;  %v220_v48 = vpop.permute.xlu0 %219 }
 0x15d   :  { %v290_v36 = vpop.f32.mrb[0].mxu1  ;;  %v390_v37 = vpop.f32.mrb[0].mxu0 }
 0x15e   :  { %v402_v38 = vpop.f32.mrb[1].mxu1  ;;  %v391_v39 = vpop.f32.mrb[1].mxu0 }
 0x15f   :  { %v293_v40 = vpop.f32.mrb[2].mxu1  ;;  %v392_v41 = vadd.f32 %v391_v39, %v390_v37  ;;  %v393_v42 = vpop.f32.mrb[2].mxu0 }
 0x160   :  { %v418_v43 = vpack.i.bf16 %v293_v40, %v290_v36  ;;  %v403_v44 = vpop.f32.mrb[3].mxu1  ;;  %v394_v45 = vpop.f32.mrb[3].mxu0 }
 0x161   :  { %v395_v46 = vadd.f32 %v394_v45, %v393_v42  ;;  %v227_v50 = vmul.f32 %v392_v41, %v220_v48 }
 0x162   :  { %419 = vrot.lane.b32.xlu1 %v418_v43, %s471_s2 }
 0x163   :  { %v228_v49 = vmul.f32 %v395_v46, %v225_v47  ;;  %v229_v55 = vadd.f32 %v227_v50, %v215_v52 }
 0x165   :  { %v230_v54 = vadd.f32 %v228_v49, %v216_v51 }
 0x1d4   :  { %v420_v53 = vpop.permute.xlu1 %419 }
 0x1d5   :  { %v422_v56 = vunpack.i.h.bf16 %v420_v53  ;;  %v421_v57 = vunpack.i.l.bf16 %v420_v53 }
 0x1d7   :  { %v307_v58 = vsel %vm305_vm10, %v230_v54, %v422_v56  ;;  %v306_v59 = vsel %vm305_vm10, %v229_v55, %v421_v57 }
 0x1d8   :  { %v310_v60 = vsel %vm308_vm11, %v307_v58, 0.0  ;;  %v309_v61 = vsel %vm308_vm11, %v306_v59, 0.0 }
 0x1d9   :  { %v372_v62 = vpack.c.bf16 %v310_v60, %v309_v61 }
 0x1db   :  { %373 = vst [vmem:[#allocation2] sm:$0xff] %v372_v62  }
 0x1dc   :  { %452 = shalt.err (!%p449_p4)
}
 0x1dd   :  { %s453_s5 = scalar_lea.hbm %s583_s4, 128 }
 0x1de   :  { %p454_p5 = scmp.ne.s32.totalorder %s583_s4, %s453_s5  ;;  %p457_p6 = scmp.lt.u32.totalorder %s453_s5, %s583_s4 }
 0x1e0   :  { %p459_p7 = pnand %p457_p6, %p454_p5 }
 0x1e2   :  { %462 = shalt.err (!%p459_p7)
}
 0x1e3   :  { %s473_s10 = smov 64   ;;  %s474_s11 = smov 4  }
 0x1e4   :  { %332 = dma.vmem_to_hbm [thread:$0]  %s327_s28, 128, %s583_s4, [#allocation3], %s473_s10, %s473_s10, %s474_s11  }
 0x1e5   :  { %463 = dma.done.wait [#allocation3], 128  }
 0x1e6   :  { %464 = vsyncadd [#allocation3], 4294967168 }
 0x1e7   :  { %336 = vsyncpa [#allocation3], 1 }

</bundles_post_ra>
